<compile_context>
chip_gen: v7x
topology: tpu7x:2x2x1
jax: 0.10.0
libtpu: 0.0.40
codegen_flags: <defaults>
</compile_context>

<pallas_src>
import functools

import numpy as np

import jax
import jax.numpy as jnp
from jax import lax
from jax.experimental import pallas as pl
from jax.experimental.pallas import tpu as pltpu


def _bn_partial_stats_kernel(x_ref, sum_ref, sumsq_ref):
    """Per-block partial BatchNorm statistics.

    x_ref:     (B, Cin, HWp) f32   (HWp padding lanes are zero -> no effect)
    sum_ref:   (1, Cin, 1)   f32   per-block per-channel sum(x)
    sumsq_ref: (1, Cin, 1)   f32   per-block per-channel sum(x^2)
    """
    n_imgs = x_ref.shape[0]
    cin = x_ref.shape[1]
    acc_s = jnp.zeros((cin, 1), jnp.float32)
    acc_q = jnp.zeros((cin, 1), jnp.float32)
    for b in range(n_imgs):                       # static unroll over the block
        x = x_ref[b]                              # (Cin, HWp), lane-dense
        acc_s = acc_s + jnp.sum(x, axis=1, keepdims=True)
        acc_q = acc_q + jnp.sum(x * x, axis=1, keepdims=True)
    sum_ref[0] = acc_s
    sumsq_ref[0] = acc_q


def _dense_conv_kernel(x_ref, scale_ref, shift_ref, w_ref, b_ref, masks_ref,
                       out_ref, *, width, mxu_dtype):
    """Fused BN(scale/shift) + ReLU + 3x3 conv + in-kernel concat for B images.

    x_ref:     (B, Cin, HWp)    f32
    scale_ref: (Cin, 1)  shift_ref: (Cin, 1)   f32 (precomputed BN fold)
    w_ref:     (9, Cout, Cin)   mxu_dtype (one weight tile per tap)
    b_ref:     (Cout, 1)        f32
    masks_ref: (9, 1, HWp)      f32 0/1 boundary masks per tap (precomputed)
    out_ref:   (B, Cin+Cout, HWp) f32  (channels [0:Cin] = x, [Cin:] = conv)
    """
    n_imgs, cin, hwp = x_ref.shape
    cout = w_ref.shape[1]

    scale = scale_ref[...]
    shift = shift_ref[...]
    bias = b_ref[...]

    for b in range(n_imgs):                       # static unroll over the block
        x = x_ref[b]                              # (Cin, HWp), lane-dense
        out_ref[b, :cin, :] = x                   # concat half 1: passthrough

        # Fused BatchNorm (folded scale/shift) + ReLU -- one f32 pass over x.
        act = jnp.maximum(x * scale + shift, 0.0)

        # 3x3 conv as 9 accumulating per-tap MXU matmuls; no im2col slab
        # scratch, taps live in vregs and are cast to mxu_dtype at the MXU.
        acc = jnp.zeros((cout, hwp), jnp.float32)
        tap = 0
        for dy in (-1, 0, 1):
            for dx in (-1, 0, 1):
                s = dy * width + dx
                shifted = act if s == 0 else pltpu.roll(act, (-s) % hwp, axis=1)
                if dy == 0 and dx == 0:
                    masked = shifted              # center tap: mask is all-true
                else:
                    masked = shifted * masks_ref[tap]   # (Cin,HWp)*(1,HWp)
                acc = acc + jnp.dot(w_ref[tap], masked.astype(mxu_dtype),
                                    preferred_element_type=jnp.float32)
                tap += 1

        out_ref[b, cin:, :] = (acc + bias).astype(out_ref.dtype)


def _pick_images_per_block(n, per_image_bytes, vmem_budget, cap):
    """Largest divisor of n that fits the VMEM budget, keeps >= 2 grid blocks
    (one per v7x TensorCore) when possible, and does not exceed `cap`."""
    if n <= 1:
        return 1
    max_b = max(1, min(n // 2, cap, vmem_budget // max(per_image_bytes, 1)))
    for b in range(max_b, 0, -1):
        if n % b == 0:
            return b
    return 1


def dense_layer_forward(x_nchw, gamma, beta, conv_w, conv_b, *,
                        mxu_dtype=jnp.float32, eps=1e-5,
                        max_images_per_block=8):
    """DenseLayer forward.

    x_nchw: (N, Cin, H, W) f32   gamma/beta: (Cin,)
    conv_w: (Cout, Cin, 3, 3)    conv_b: (Cout,)
    returns (N, Cin + Cout, H, W)  ==  torch.cat([x, conv(relu(bn(x)))], dim=1)

    mxu_dtype=jnp.bfloat16 selects the bf16 MXU path (recommended on v5e, v6e
    and v7x alike); f32 accumulation and f32 BN/elementwise math are kept.
    """
    n, cin, h, w = x_nchw.shape
    cout = conv_w.shape[0]
    ctot = cin + cout
    hw = h * w
    hwp = ((hw + 127) // 128) * 128       # lane-dense padded spatial axis

    # Free reshape; pad the lane axis with zeros if H*W is not a 128 multiple
    # so every in-kernel store stays unmasked and lane-dense.
    x_flat = x_nchw.reshape(n, cin, hw)
    if hwp != hw:
        x_flat = jnp.pad(x_flat, ((0, 0), (0, 0), (0, hwp - hw)))

    gamma_c = gamma.reshape(cin, 1).astype(jnp.float32)
    beta_c = beta.reshape(cin, 1).astype(jnp.float32)
    bias_c = conv_b.reshape(cout, 1).astype(jnp.float32)
    # (Cout, Cin, 3, 3) -> (ky, kx, Cout, Cin) -> (9, Cout, Cin): one weight
    # tile per tap so the kernel never lane-slices the weight value.
    w_taps = conv_w.transpose(2, 3, 0, 1).reshape(9, cout, cin).astype(mxu_dtype)

    # Static per-lane 0/1 boundary masks for the 9 taps (numpy: zero runtime).
    lane = np.arange(hwp)
    row = lane // w
    col = lane % w
    tap_masks = []
    for dy in (-1, 0, 1):
        for dx in (-1, 0, 1):
            valid = ((row + dy >= 0) & (row + dy < h) &
                     (col + dx >= 0) & (col + dx < w) & (lane < hw))
            tap_masks.append(valid.astype(np.float32))
    masks = jnp.asarray(np.stack(tap_masks)).reshape(9, 1, hwp)

    # Images per grid block: amortize per-step overhead / weight handling while
    # keeping >= 2 blocks and staying inside a conservative VMEM budget
    # (double-buffered input + output block).
    per_image_bytes = 2 * (cin + ctot) * hwp * 4
    imgs = _pick_images_per_block(n, per_image_bytes, 24 * 1024 * 1024,
                                  max_images_per_block)
    num_blocks = n // imgs

    # 48 MiB: raises the v5e/v6e scoped default while leaving headroom under
    # v7x's 64 MiB physical VMEM.
    cparams = pltpu.CompilerParams(dimension_semantics=("parallel",),
                                   vmem_limit_bytes=48 * 1024 * 1024)

    # ---- Pass 1: parallel partial BN statistics, tiny fold in the wrapper. ----
    psum, psq = pl.pallas_call(
        _bn_partial_stats_kernel,
        out_shape=(jax.ShapeDtypeStruct((num_blocks, cin, 1), jnp.float32),
                   jax.ShapeDtypeStruct((num_blocks, cin, 1), jnp.float32)),
        grid=(num_blocks,),
        in_specs=[pl.BlockSpec((imgs, cin, hwp), lambda i: (i, 0, 0))],
        out_specs=(pl.BlockSpec((1, cin, 1), lambda i: (i, 0, 0)),
                   pl.BlockSpec((1, cin, 1), lambda i: (i, 0, 0))),
        compiler_params=cparams,
    )(x_flat)

    inv_count = 1.0 / float(n * hw)               # real elements only (pad = 0)
    sum_x = jnp.sum(psum, axis=0)                 # (Cin, 1)
    sum_xx = jnp.sum(psq, axis=0)                 # (Cin, 1)
    mean = sum_x * inv_count
    var = jnp.maximum(sum_xx * inv_count - mean * mean, 0.0)   # clamp >= 0
    inv_std = lax.rsqrt(var + eps)
    scale = gamma_c * inv_std
    shift = beta_c - mean * scale

    # ---- Pass 2: fused BN+ReLU+conv + in-kernel concat (parallel over N). ----
    out_flat = pl.pallas_call(
        functools.partial(_dense_conv_kernel, width=w, mxu_dtype=mxu_dtype),
        out_shape=jax.ShapeDtypeStruct((n, ctot, hwp), jnp.float32),
        grid=(num_blocks,),
        in_specs=[pl.BlockSpec((imgs, cin, hwp), lambda i: (i, 0, 0)),
                  pl.BlockSpec((cin, 1), lambda i: (0, 0)),
                  pl.BlockSpec((cin, 1), lambda i: (0, 0)),
                  pl.BlockSpec((9, cout, cin), lambda i: (0, 0, 0)),
                  pl.BlockSpec((cout, 1), lambda i: (0, 0)),
                  pl.BlockSpec((9, 1, hwp), lambda i: (0, 0, 0))],
        out_specs=pl.BlockSpec((imgs, ctot, hwp), lambda i: (i, 0, 0)),
        compiler_params=cparams,
    )(x_flat, scale, shift, w_taps, bias_c, masks)

    if hwp != hw:
        out_flat = out_flat[:, :, :hw]
    return out_flat.reshape(n, ctot, h, w)


def _reference_forward(x, gamma, beta, conv_w, conv_b):
    """Pure-JAX reference mirroring the PyTorch module (NCHW, training-mode BN)."""
    mu = jnp.mean(x, axis=(0, 2, 3), keepdims=True)
    var = jnp.mean(jnp.square(x - mu), axis=(0, 2, 3), keepdims=True)
    act = (x - mu) / jnp.sqrt(var + 1e-5)
    act = act * gamma.reshape(1, -1, 1, 1) + beta.reshape(1, -1, 1, 1)
    act = jnp.maximum(act, 0.0)
    conv = lax.conv_general_dilated(
        act, conv_w, window_strides=(1, 1), padding=((1, 1), (1, 1)),
        dimension_numbers=("NCHW", "OIHW", "NCHW"),
    ) + conv_b.reshape(1, -1, 1, 1)
    return jnp.concatenate([x, conv], axis=1)


if __name__ == "__main__":
    def run_case(n, cin, h, w, growth):
        key = jax.random.PRNGKey(0)
        kx, kg, kb, kw, kbi = jax.random.split(key, 5)
        x = jax.random.normal(kx, (n, cin, h, w), jnp.float32)
        gamma = 1.0 + 0.1 * jax.random.normal(kg, (cin,), jnp.float32)
        beta = 0.1 * jax.random.normal(kb, (cin,), jnp.float32)
        conv_w = 0.1 * jax.random.normal(kw, (growth, cin, 3, 3), jnp.float32)
        conv_b = 0.1 * jax.random.normal(kbi, (growth,), jnp.float32)

        ref = jax.block_until_ready(
            _reference_forward(x, gamma, beta, conv_w, conv_b))

        # f32 MXU operands: exact-semantics path.
        out = jax.block_until_ready(
            dense_layer_forward(x, gamma, beta, conv_w, conv_b))
        assert out.shape == (n, cin + growth, h, w), out.shape
        assert jnp.allclose(out, ref, rtol=2e-3, atol=2e-3), \
            float(jnp.max(jnp.abs(out - ref)))

        # bf16 MXU operands (fast path on v5e/v6e/v7x), f32 accumulation.
        out_bf16 = jax.block_until_ready(
            dense_layer_forward(x, gamma, beta, conv_w, conv_b,
                                mxu_dtype=jnp.bfloat16))
        assert jnp.allclose(out_bf16, ref, rtol=1e-2, atol=1e-2), \
            float(jnp.max(jnp.abs(out_bf16 - ref)))

    # Spec-consistent small shape: H*W = 256 (already a 128 multiple), B=1/block.
    run_case(2, 4, 16, 16, 8)
    # Exercise the padded lane axis (10*10=100 -> 128) and 2-images-per-block
    # batching with 2 parallel grid blocks.
    run_case(4, 4, 10, 10, 8)

    print("KERNEL_OK")
</pallas_src>

<mosaic_0001>
module attributes {stable_mosaic.version = 11 : i64} {
  func.func @_bn_partial_stats_kernel(%arg0: i32, %arg1: memref<1x4x256xf32, #tpu.memory_space<vmem>>, %arg2: memref<1x4x1xf32, #tpu.memory_space<vmem>>, %arg3: memref<1x4x1xf32, #tpu.memory_space<vmem>>) attributes {dimension_semantics = [#tpu.dimension_semantics<parallel>], iteration_bounds = array<i64: 2>, scalar_prefetch = 0 : i64, scratch_operands = 0 : i64, tpu.core_type = #tpu.core_type<tc>, window_params = [{transform_indices = @transform_0, window_bounds = array<i64: 1, 4, 256>}, {transform_indices = @transform_1, window_bounds = array<i64: 1, 4, 1>}, {transform_indices = @transform_2, window_bounds = array<i64: 1, 4, 1>}]} {
    %cst = arith.constant 0.000000e+00 : f32
    %0 = vector.broadcast %cst : f32 to vector<4x1xf32>
    %cst_0 = arith.constant 0.000000e+00 : f32
    %1 = vector.broadcast %cst_0 : f32 to vector<4x1xf32>
    %c0 = arith.constant 0 : index
    %c0_1 = arith.constant 0 : index
    %c0_2 = arith.constant 0 : index
    %2 = vector.load %arg1[%c0, %c0_1, %c0_2] : memref<1x4x256xf32, #tpu.memory_space<vmem>>, vector<1x4x256xf32>
    %3 = vector.shape_cast %2 : vector<1x4x256xf32> to vector<4x256xf32>
    %cst_3 = arith.constant dense<0.000000e+00> : vector<4xf32>
    %4 = vector.multi_reduction <add>, %3, %cst_3 [1] : vector<4x256xf32> to vector<4xf32>
    %5 = vector.shape_cast %4 : vector<4xf32> to vector<4x1xf32>
    %6 = arith.addf %0, %5 : vector<4x1xf32>
    %7 = arith.mulf %3, %3 : vector<4x256xf32>
    %cst_4 = arith.constant dense<0.000000e+00> : vector<4xf32>
    %8 = vector.multi_reduction <add>, %7, %cst_4 [1] : vector<4x256xf32> to vector<4xf32>
    %9 = vector.shape_cast %8 : vector<4xf32> to vector<4x1xf32>
    %10 = arith.addf %1, %9 : vector<4x1xf32>
    %c0_5 = arith.constant 0 : index
    %c0_6 = arith.constant 0 : index
    %c0_7 = arith.constant 0 : index
    %11 = vector.load %arg2[%c0_5, %c0_6, %c0_7] : memref<1x4x1xf32, #tpu.memory_space<vmem>>, vector<1x4x1xf32>
    %12 = vector.shape_cast %11 : vector<1x4x1xf32> to vector<4x1xf32>
    %13 = vector.shape_cast %6 : vector<4x1xf32> to vector<1x4x1xf32>
    tpu.vector_store %arg2[%c0_5, %c0_6, %c0_7], %13 {strides = array<i32>} : memref<1x4x1xf32, #tpu.memory_space<vmem>>, vector<1x4x1xf32>,
    %c0_8 = arith.constant 0 : index
    %c0_9 = arith.constant 0 : index
    %c0_10 = arith.constant 0 : index
    %14 = vector.load %arg3[%c0_8, %c0_9, %c0_10] : memref<1x4x1xf32, #tpu.memory_space<vmem>>, vector<1x4x1xf32>
    %15 = vector.shape_cast %14 : vector<1x4x1xf32> to vector<4x1xf32>
    %16 = vector.shape_cast %10 : vector<4x1xf32> to vector<1x4x1xf32>
    tpu.vector_store %arg3[%c0_8, %c0_9, %c0_10], %16 {strides = array<i32>} : memref<1x4x1xf32, #tpu.memory_space<vmem>>, vector<1x4x1xf32>,
    return
  }
  func.func @transform_0(%arg0: i32) -> (i32, i32, i32) {
    %c0_i32 = arith.constant 0 : i32
    %c0_i32_0 = arith.constant 0 : i32
    %c0_i32_1 = arith.constant 0 : i32
    return %arg0, %c0_i32, %c0_i32_0 : i32, i32, i32
  }
  func.func @transform_1(%arg0: i32) -> (i32, i32, i32) {
    %c0_i32 = arith.constant 0 : i32
    %c0_i32_0 = arith.constant 0 : i32
    %c0_i32_1 = arith.constant 0 : i32
    return %arg0, %c0_i32, %c0_i32_0 : i32, i32, i32
  }
  func.func @transform_2(%arg0: i32) -> (i32, i32, i32) {
    %c0_i32 = arith.constant 0 : i32
    %c0_i32_0 = arith.constant 0 : i32
    %c0_i32_1 = arith.constant 0 : i32
    return %arg0, %c0_i32, %c0_i32_0 : i32, i32, i32
  }
}

</mosaic_0001>

<bundles_post_ra>
// kernel: tpu_custom_call.1
= control target key start
LH: loop header
LB: loop body
LE: loop exit
PB: predicated region body
PF: predicated region fallthrough
CT: control target
= control target key end

     0   :  { %8 = vsyncpa [#allocation3], 0  ;;  %s536_s0 = inlined_call_operand.hbm [shape: f32[2,4,256], index: 0, kind: input, shape index: {}]   ;;  %s537_s1 = inlined_call_operand.vmem [shape: f32[2,4,1], index: 1, kind: output, shape index: {0}]   ;;  %s538_s2 = inlined_call_operand.vmem [shape: f32[2,4,1], index: 2, kind: output, shape index: {1}]  }
   0x1   :  { %10 = vsyncpa [#allocation3 + $0x1], 0  ;;  %s426_s9 = smov 0   ;;  %s428_s10 = smov 0  }
   0x2   :  { %s430_s11 = smov 0   ;;  %s432_s12 = smov 0  }
   0x3 LB: > { %s445_s13 = sadd.s32 4294967295, %s408_s12   ;;  %s448_s14 = sadd.s32 1, %s408_s12   ;;  %s408_s12 = sphi %s432_s12, %s546_s12   ;;  %s404_s11 = sphi %s430_s11, %s545_s11   ;;  %s400_s10 = sphi %s428_s10, %s544_s10   ;;  %s396_s9 = sphi %s426_s9, %s543_s9  }
   0x4   : > { %s20_s15 = ssub.s32 %s408_s12, %s448_s14  ;;  %s23_s16 = sadd.s32 1, %s404_s11 }
   0x5   : > { %p21_p0 = scmp.eq.s32.totalorder %s20_s15, 0  ;;  %p30_p1 = scmp.ne.s32.totalorder %s404_s11, %s400_s10 }
   0x6   : > { %p31_p2 = scmp.eq.s32.totalorder %s408_s12, 0  ;;  %p36_p3 = scmp.ne.s32.totalorder %s400_s10, %s396_s9 }
   0x7   : > { %s458_s17 = scalar_select %p21_p0, %s404_s11, %s23_s16  }
   0x8   : > { %p32_p4 = por %p31_p2, %p30_p1  ;;  %p37_p5 = scmp.eq.s32.totalorder %s445_s13, 0 }
   0x9   : > { %p310_p6 = scmp.lt.s32.totalorder %s408_s12, 2  ;;  %s112_s19 = sand.u32 1, %s404_s11  }
   0xa   : > { %p462_p7 = por %p37_p5, %p36_p3  ;;  %s294_s20 = sshll.u32 %s112_s19, 3 }
   0xb   : > { %s303_s21 = sshll.u32 %s408_s12, 7  ;;  %s116_s25 = scalar_lea.vmem [#allocation2], %s294_s20 }
   0xc   : > { %s471_s24 = scalar_lea.hbm %s536_s0, %s303_s21  ;;  %s124_s26 = sshll.u32 %s116_s25, 4  ;;  %s473_s26 = int_to_ptr.vmem [resolvable:$true] %s124_s26 }
   0xd   : > { %p475_p8 = pnand %p310_p6, %p32_p4  ;;  %s113_s28 = scalar_lea.sflag [#allocation3], %s112_s19 }
   0xe   : > { %s344_s29 = scalar_lea.hbm %s471_s24, 128  ;;  %s349_s4 = scalar_lea.hbm %s536_s0, 256 }
   0xf   : > { %p345_p11 = scmp.ne.s32.totalorder %s471_s24, %s344_s29  ;;  %p346_p12 = pneg %p475_p8 }
  0x10   : > { %p350_p1 = scmp.lt.u32.totalorder %s471_s24, %s536_s0  ;;  %p351_p2 = scmp.lt.u32.totalorder %s349_s4, %s344_s29 }
  0x11   : > { %p347_p13 = pnand %p346_p12, %p345_p11  ;;  %p353_p4 = scmp.lt.u32.totalorder %s344_s29, %s471_s24 }
  0x12   : > { %p352_p3 = por %p351_p2, %p350_p1 }
  0x13   : > { %p348_p0 = pneg %p347_p13 }
  0x14   : > { %p354_p5 = por %p353_p4, %p352_p3 }
  0x16   : > { %p355_p6 = pnand %p354_p5, %p348_p0 }
  0x18   : > { %358 = shalt.err (!%p355_p6)
}
  0x19   : > { %s359_s7 = scalar_lea.vmem %s473_s26, 128  ;;  %s410_s8 = smov [#allocation2]  }
  0x1a   : > { %p360_p11 = scmp.ne.s32.totalorder %s473_s26, %s359_s7  ;;  %s364_s9 = sshll.u32 %s410_s8, 4  ;;  %s365_s9 = int_to_ptr.vmem [resolvable:$false] %s364_s9 }
  0x1b   : > { %s366_s15 = scalar_lea.vmem %s365_s9, 256  ;;  %p367_p10 = scmp.lt.s32.totalorder %s473_s26, %s365_s9 }
  0x1c   : > { %p362_p13 = pnand %p360_p11, %p346_p12  ;;  %p368_p1 = scmp.lt.s32.totalorder %s366_s15, %s359_s7 }
  0x1e   : > { %p363_p9 = pneg %p362_p13  ;;  %p369_p2 = por %p368_p1, %p367_p10 }
  0x20   : > { %p370_p3 = pnand %p369_p2, %p363_p9 }
  0x22   : > { %373 = shalt.err (!%p370_p3)
}
  0x23   : > { %309 = dma.hbm_to_vmem [thread:$0]  (!%p475_p8), %s471_s24, 128, %s473_s26, %s113_s28  }
  0x24   : > { %p541_p0 = scmp.lt.s32.totalorder %s408_s12, 3  ;;  %p542_p4 = scmp.ge.s32.totalorder %s408_s12, 1 }
  0x26   : > { %p130_p12 = pnand %p542_p4, %p541_p0 }
  0x27   : > { %s135_s16 = sand.u32 (!%p130_p12), 1, %s400_s10  }
  0x28   : > { %133 = sbr.rel (%p130_p12) target bundleno = 201 (0xc9), region = 24  ;;  %s298_s19 = sshll.u32 (!%p130_p12), %s135_s16, 3 }
  0x29   : > { %s136_s20 = scalar_lea.sflag (!%p130_p12), [#allocation3], %s135_s16  ;;  %s139_s21 = scalar_lea.vmem (!%p130_p12), [#allocation2], %s298_s19 }
  0x2f   : > { %391 = dma.done.wait (%p462_p7), %s136_s20, 128  }
  0x30   : > { %393 = vsyncadd (%p462_p7), %s136_s20, 4294967168  ;;  %vm175_vm0 = vcmask 1043456   ;;  %v171_v0 = vld [vmem:[%s139_s21] sm:$0xff]  ;;  %p163_p8 = scmp.lt.s32.totalorder %s445_s13, 1  ;;  %vm192_vm1 = vcmask 3072  }
  0x31   : > { %v173_v1 = vcombine.high %v171_v0, %v171_v0  ;;  %v176_v2 = vsel %vm175_vm0, %v171_v0, 0.0  ;;  %v182_v3 = vmul.f32 %v171_v0, %v171_v0 }
  0x32   : > { %s548_s13 = smov (!%p163_p8, %s445_s13), 1 }
  0x33   : > { %v177_v4 = vsel %vm175_vm0, %v173_v1, 0.0  ;;  %v184_v5 = vcombine.high %v182_v3, %v182_v3  ;;  %v186_v6 = vsel %vm175_vm0, %v182_v3, 0.0  ;;  %s299_s12 = sshll.u32 %s548_s13, 2 }
  0x34   : > { %v178_v7 = vadd.f32 %v177_v4, %v176_v2  ;;  %s166_s23 = scalar_lea.vmem %s537_s1, %s299_s12  ;;  %s170_s26 = scalar_lea.vmem %s538_s2, %s299_s12 }
  0x35   : > { %v187_v8 = vsel %vm175_vm0, %v184_v5, 0.0 }
  0x36   : > { %179 = vadd.xlane.f32.xlu0 %v178_v7  ;;  %v188_v9 = vadd.f32 %v187_v8, %v186_v6 }
  0x3a   : > { %189 = vadd.xlane.f32.xlu0 %v188_v9 }
  0xc3   : > { %v180_v10 = vpop.xlane.xlu0 %179 }
  0xc4   : > { %193 = vst.msk [vmem:[%s166_s23] sm:$0xf] %vm192_vm1, %v180_v10 }
  0xc7   : > { %v190_v11 = vpop.xlane.xlu0 %189 }
  0xc8   : > { %194 = vst.msk [vmem:[%s170_s26] sm:$0xf] %vm192_vm1, %v190_v11 }
  0xc9 PF: > { %p13_p7 = scmp.ge.s32.totalorder %s448_s14, 4   ;;  %s543_s9 = smov %s400_s10 }
  0xca   : > { %s544_s10 = smov %s404_s11  ;;  %s545_s11 = smov %s458_s17 }
  0xcb   : > { %s546_s12 = smov %s448_s14  ;;  %15 = sbr.rel (!%p13_p7) target bundleno = 3 (0x3), region = 76 }
  0xd2   :  { %228 = vsyncpa [#allocation3], 1 }
  0xd3   :  { %230 = vsyncpa [#allocation3 + $0x1], 1 }

</bundles_post_ra>
